<compile_context>
chip_gen: v6e
topology: v6e:2x2x1
jax: 0.10.0
libtpu: 0.0.40
codegen_flags: <defaults>
</compile_context>

<pallas_src>
import jax
import jax.numpy as jnp
from jax import lax
from jax.experimental import pallas as pl
from jax.experimental.pallas import tpu as pltpu

XI = 10.0
EPS = 1.0
IP = 1


# ----------------------------------------------------------------- kernel ---
def _make_vat_kernel(*, batch, tile_b, xi, eps, ip):
    inv_b = 1.0 / float(batch)
    grad_coef = float(xi) * inv_b        # xi (d x_pert/d d) and 1/B (batchmean) folded

    def kernel(x_ref, draw_ref, w_ref, wt_ref, b_ref, out_ref):
        x = x_ref[...]                   # (TB, D) f32
        w = w_ref[...]                   # (D, K)  bf16   (VMEM-resident)
        wt = wt_ref[...]                 # (K, D)  bf16   (VMEM-resident)
        bias = b_ref[...]                # (1, K)  f32    (VMEM-resident)

        def model_probs(xp):
            # MXU in bf16, accumulate + softmax in f32.
            z = jnp.dot(xp.astype(jnp.bfloat16), w,
                        preferred_element_type=jnp.float32) + bias
            z = z - jnp.max(z, axis=-1, keepdims=True)
            e = jnp.exp(z)
            return e * pl.reciprocal(jnp.sum(e, axis=-1, keepdims=True),
                                     approx=True)

        def l2_normalize(v):
            # matches torch _l2_normalize: v / (||v||_2 + 1e-8), per sample
            nrm = jnp.sqrt(jnp.sum(v * v, axis=-1, keepdims=True))
            return v * pl.reciprocal(nrm + 1e-8, approx=True)

        # pred = model(x)[0]   (no perturbation operand, no zeros DMA)
        p = model_probs(x)

        # d = _l2_normalize(randn_like(x))
        d = l2_normalize(draw_ref[...])

        # Power iteration(s); ip is a static hyperparameter -> unrolled.
        for _ in range(ip):
            q = model_probs(x + xi * d)                      # model(x + xi*d)[0]
            # analytic grad of (1/B) sum p*(log p - log(q+1e-16)) wrt d
            u = -(p * q / (q + 1e-16)) * grad_coef           # q * dL/dq * xi
            dz = u - q * jnp.sum(u, axis=-1, keepdims=True)  # dL/dlogits * xi
            gd = jnp.dot(dz.astype(jnp.bfloat16), wt,
                         preferred_element_type=jnp.float32)  # (TB, D)
            d = l2_normalize(gd)

        # r_adv = eps * d ;  lds = KL(pred || model(x + r_adv)[0]) batchmean
        q = model_probs(x + eps * d)
        logq = jnp.log(q + 1e-16)
        elt = jnp.where(p > 0.0, p * (jnp.log(p) - logq), 0.0)   # xlogy guard
        row_kl = jnp.sum(elt, axis=-1, keepdims=True)            # (TB, 1)

        # mask padded rows of the last (partial) batch tile
        row_id = (lax.broadcasted_iota(jnp.int32, (tile_b, 1), 0)
                  + pl.program_id(0) * tile_b)
        row_kl = jnp.where(row_id < batch, row_kl, 0.0)

        out_ref[...] = jnp.sum(row_kl, axis=0, keepdims=True) * inv_b  # (1, 1)

    return kernel


# ---------------------------------------------------------------- wrapper ---
def _pick_tile_b(batch, d):
    """Batch tile: full batch if tiny, else a multiple of 8 bounded by VMEM."""
    if batch <= 8:
        return int(batch)
    budget = 16 * 1024 * 1024                 # bytes for (TB, D) f32 streams+temps
    tb = max(1, budget // (10 * d * 4))
    tb = min(tb, batch)
    tb = max(8, (tb // 8) * 8)
    return int(tb)


def _vat_loss_impl(params, x, key):
    Wm, bm = params
    B = x.shape[0]
    D, K = Wm.shape
    xflat = x.reshape(B, D).astype(jnp.float32)            # same as torch .view(B,-1)

    # d = randn_like(x), flattened (normalized inside the fused kernel)
    d_raw = jax.random.normal(key, x.shape, jnp.float32).reshape(B, D)

    # bf16 MXU operands; W pre-transposed once for the backward matmul
    w_bf = Wm.astype(jnp.bfloat16)                         # (D, K)
    wt_bf = Wm.T.astype(jnp.bfloat16)                      # (K, D)
    b2 = bm.reshape(1, K).astype(jnp.float32)

    TB = _pick_tile_b(B, D)
    nb = (B + TB - 1) // TB

    # VMEM budget: double-buffered (TB,D) f32 streams + resident bf16 weights
    tile_stream = 2 * (2 * TB * D * 4)
    resident = 2 * (2 * D * K * 2 + K * 4)
    vmem_limit = int(min(96 << 20, max(16 << 20,
                                       2 * tile_stream + resident + (4 << 20))))

    kernel = _make_vat_kernel(batch=B, tile_b=TB,
                              xi=float(XI), eps=float(EPS), ip=int(IP))

    partials = pl.pallas_call(
        kernel,
        out_shape=jax.ShapeDtypeStruct((nb, 1), jnp.float32),
        grid=(nb,),
        in_specs=[
            pl.BlockSpec((TB, D), lambda i: (i, 0)),       # x tile
            pl.BlockSpec((TB, D), lambda i: (i, 0)),       # raw random d tile
            pl.BlockSpec((D, K), lambda i: (0, 0)),        # W   (resident)
            pl.BlockSpec((K, D), lambda i: (0, 0)),        # W^T (resident)
            pl.BlockSpec((1, K), lambda i: (0, 0)),        # bias (resident)
        ],
        out_specs=pl.BlockSpec((1, 1), lambda i: (i, 0)),  # per-tile partial KL
        compiler_params=pltpu.CompilerParams(
            dimension_semantics=("parallel",),
            vmem_limit_bytes=vmem_limit,
        ),
    )(xflat, d_raw, w_bf, wt_bf, b2)

    return jnp.sum(partials)                               # scalar lds


vat_loss_lplp = jax.jit(_vat_loss_impl)


# ------------------------------------------------------------------- main ---
if __name__ == "__main__":
    B, C, H, W_sp = 2, 4, 16, 16
    K = 16
    D = C * H * W_sp

    key = jax.random.PRNGKey(0)
    k_x, k_w, k_d = jax.random.split(key, 3)

    x = jax.random.normal(k_x, (B, C, H, W_sp), jnp.float32)   # NCHW, like torch
    Wm = 0.02 * jax.random.normal(k_w, (D, K), jnp.float32)    # linear weight
    bm = jnp.zeros((K,), jnp.float32)                          # linear bias

    lds = vat_loss_lplp((Wm, bm), x, k_d)
    lds = jax.block_until_ready(lds)
    assert lds.shape == () and bool(jnp.isfinite(lds))
    print("KERNEL_OK")
</pallas_src>

<mosaic_0001>
module attributes {stable_mosaic.version = 11 : i64} {
  func.func @kernel(%arg0: i32, %arg1: memref<2x1024xf32, #tpu.memory_space<vmem>>, %arg2: memref<2x1024xf32, #tpu.memory_space<vmem>>, %arg3: memref<1024x16xbf16, #tpu.memory_space<vmem>>, %arg4: memref<16x1024xbf16, #tpu.memory_space<vmem>>, %arg5: memref<1x16xf32, #tpu.memory_space<vmem>>, %arg6: memref<1x1xf32, #tpu.memory_space<vmem>>) attributes {dimension_semantics = [#tpu.dimension_semantics<parallel>], iteration_bounds = array<i64: 1>, scalar_prefetch = 0 : i64, scratch_operands = 0 : i64, tpu.core_type = #tpu.core_type<tc>, window_params = [{transform_indices = @transform_0, window_bounds = array<i64: 2, 1024>}, {transform_indices = @transform_1, window_bounds = array<i64: 2, 1024>}, {pipeline_mode = #tpu.pipeline_mode<synchronous>, transform_indices = @transform_2, window_bounds = array<i64: 1024, 16>}, {pipeline_mode = #tpu.pipeline_mode<synchronous>, transform_indices = @transform_3, window_bounds = array<i64: 16, 1024>}, {pipeline_mode = #tpu.pipeline_mode<synchronous>, transform_indices = @transform_4, window_bounds = array<i64: 1, 16>}, {transform_indices = @transform_5, window_bounds = array<i64: 1, 1>}]} {
    %c0 = arith.constant 0 : index
    %c0_0 = arith.constant 0 : index
    %0 = vector.load %arg1[%c0, %c0_0] : memref<2x1024xf32, #tpu.memory_space<vmem>>, vector<2x1024xf32>
    %c0_1 = arith.constant 0 : index
    %c0_2 = arith.constant 0 : index
    %1 = vector.load %arg3[%c0_1, %c0_2] : memref<1024x16xbf16, #tpu.memory_space<vmem>>, vector<1024x16xbf16>
    %c0_3 = arith.constant 0 : index
    %c0_4 = arith.constant 0 : index
    %2 = vector.load %arg4[%c0_3, %c0_4] : memref<16x1024xbf16, #tpu.memory_space<vmem>>, vector<16x1024xbf16>
    %c0_5 = arith.constant 0 : index
    %c0_6 = arith.constant 0 : index
    %3 = vector.load %arg5[%c0_5, %c0_6] : memref<1x16xf32, #tpu.memory_space<vmem>>, vector<1x16xf32>
    %4 = arith.truncf %0 : vector<2x1024xf32> to vector<2x1024xbf16>
    %cst = arith.constant dense<0.000000e+00> : vector<2x16xf32>
    %5 = tpu.matmul %4, %1, %cst {dimension_numbers = #tpu.dot_dimension_numbers<[1], [0], [0], [1], [0, 0, 1, 1], [], []>} : vector<2x1024xbf16>, vector<1024x16xbf16>, vector<2x16xf32> -> vector<2x16xf32>
    %6 = vector.broadcast %3 : vector<1x16xf32> to vector<2x16xf32>
    %7 = arith.addf %5, %6 : vector<2x16xf32>
    %cst_7 = arith.constant dense<0xFF800000> : vector<2xf32>
    %8 = vector.multi_reduction <maximumf>, %7, %cst_7 [1] : vector<2x16xf32> to vector<2xf32>
    %9 = vector.shape_cast %8 : vector<2xf32> to vector<2x1xf32>
    %10 = vector.broadcast %9 : vector<2x1xf32> to vector<2x16xf32>
    %11 = arith.subf %7, %10 : vector<2x16xf32>
    %12 = math.exp %11 : vector<2x16xf32>
    %cst_8 = arith.constant dense<0.000000e+00> : vector<2xf32>
    %13 = vector.multi_reduction <add>, %12, %cst_8 [1] : vector<2x16xf32> to vector<2xf32>
    %14 = vector.shape_cast %13 : vector<2xf32> to vector<2x1xf32>
    %15 = tpu.reciprocal %14 {approx = true} : vector<2x1xf32> -> vector<2x1xf32>
    %16 = vector.broadcast %15 : vector<2x1xf32> to vector<2x16xf32>
    %17 = arith.mulf %12, %16 : vector<2x16xf32>
    %c0_9 = arith.constant 0 : index
    %c0_10 = arith.constant 0 : index
    %18 = vector.load %arg2[%c0_9, %c0_10] : memref<2x1024xf32, #tpu.memory_space<vmem>>, vector<2x1024xf32>
    %19 = arith.mulf %18, %18 : vector<2x1024xf32>
    %cst_11 = arith.constant dense<0.000000e+00> : vector<2xf32>
    %20 = vector.multi_reduction <add>, %19, %cst_11 [1] : vector<2x1024xf32> to vector<2xf32>
    %21 = vector.shape_cast %20 : vector<2xf32> to vector<2x1xf32>
    %22 = math.sqrt %21 : vector<2x1xf32>
    %cst_12 = arith.constant 9.99999993E-9 : f32
    %23 = vector.broadcast %cst_12 : f32 to vector<2x1xf32>
    %24 = arith.addf %22, %23 : vector<2x1xf32>
    %25 = tpu.reciprocal %24 {approx = true} : vector<2x1xf32> -> vector<2x1xf32>
    %26 = vector.broadcast %25 : vector<2x1xf32> to vector<2x1024xf32>
    %27 = arith.mulf %18, %26 : vector<2x1024xf32>
    %cst_13 = arith.constant 1.000000e+01 : f32
    %28 = vector.broadcast %cst_13 : f32 to vector<2x1024xf32>
    %29 = arith.mulf %28, %27 : vector<2x1024xf32>
    %30 = arith.addf %0, %29 : vector<2x1024xf32>
    %31 = arith.truncf %30 : vector<2x1024xf32> to vector<2x1024xbf16>
    %cst_14 = arith.constant dense<0.000000e+00> : vector<2x16xf32>
    %32 = tpu.matmul %31, %1, %cst_14 {dimension_numbers = #tpu.dot_dimension_numbers<[1], [0], [0], [1], [0, 0, 1, 1], [], []>} : vector<2x1024xbf16>, vector<1024x16xbf16>, vector<2x16xf32> -> vector<2x16xf32>
    %33 = vector.broadcast %3 : vector<1x16xf32> to vector<2x16xf32>
    %34 = arith.addf %32, %33 : vector<2x16xf32>
    %cst_15 = arith.constant dense<0xFF800000> : vector<2xf32>
    %35 = vector.multi_reduction <maximumf>, %34, %cst_15 [1] : vector<2x16xf32> to vector<2xf32>
    %36 = vector.shape_cast %35 : vector<2xf32> to vector<2x1xf32>
    %37 = vector.broadcast %36 : vector<2x1xf32> to vector<2x16xf32>
    %38 = arith.subf %34, %37 : vector<2x16xf32>
    %39 = math.exp %38 : vector<2x16xf32>
    %cst_16 = arith.constant dense<0.000000e+00> : vector<2xf32>
    %40 = vector.multi_reduction <add>, %39, %cst_16 [1] : vector<2x16xf32> to vector<2xf32>
    %41 = vector.shape_cast %40 : vector<2xf32> to vector<2x1xf32>
    %42 = tpu.reciprocal %41 {approx = true} : vector<2x1xf32> -> vector<2x1xf32>
    %43 = vector.broadcast %42 : vector<2x1xf32> to vector<2x16xf32>
    %44 = arith.mulf %39, %43 : vector<2x16xf32>
    %45 = arith.mulf %17, %44 : vector<2x16xf32>
    %cst_17 = arith.constant 1.000000e-16 : f32
    %46 = vector.broadcast %cst_17 : f32 to vector<2x16xf32>
    %47 = arith.addf %44, %46 : vector<2x16xf32>
    %48 = arith.divf %45, %47 : vector<2x16xf32>
    %cst_18 = arith.constant 0.000000e+00 : f32
    %49 = vector.broadcast %cst_18 : f32 to vector<2x16xf32>
    %50 = arith.subf %49, %48 : vector<2x16xf32>
    %cst_19 = arith.constant 5.000000e+00 : f32
    %51 = vector.broadcast %cst_19 : f32 to vector<2x16xf32>
    %52 = arith.mulf %50, %51 : vector<2x16xf32>
    %cst_20 = arith.constant dense<0.000000e+00> : vector<2xf32>
    %53 = vector.multi_reduction <add>, %52, %cst_20 [1] : vector<2x16xf32> to vector<2xf32>
    %54 = vector.shape_cast %53 : vector<2xf32> to vector<2x1xf32>
    %55 = vector.broadcast %54 : vector<2x1xf32> to vector<2x16xf32>
    %56 = arith.mulf %44, %55 : vector<2x16xf32>
    %57 = arith.subf %52, %56 : vector<2x16xf32>
    %58 = arith.truncf %57 : vector<2x16xf32> to vector<2x16xbf16>
    %cst_21 = arith.constant dense<0.000000e+00> : vector<2x1024xf32>
    %59 = tpu.matmul %58, %2, %cst_21 {dimension_numbers = #tpu.dot_dimension_numbers<[1], [0], [0], [1], [0, 0, 1, 1], [], []>} : vector<2x16xbf16>, vector<16x1024xbf16>, vector<2x1024xf32> -> vector<2x1024xf32>
    %60 = arith.mulf %59, %59 : vector<2x1024xf32>
    %cst_22 = arith.constant dense<0.000000e+00> : vector<2xf32>
    %61 = vector.multi_reduction <add>, %60, %cst_22 [1] : vector<2x1024xf32> to vector<2xf32>
    %62 = vector.shape_cast %61 : vector<2xf32> to vector<2x1xf32>
    %63 = math.sqrt %62 : vector<2x1xf32>
    %cst_23 = arith.constant 9.99999993E-9 : f32
    %64 = vector.broadcast %cst_23 : f32 to vector<2x1xf32>
    %65 = arith.addf %63, %64 : vector<2x1xf32>
    %66 = tpu.reciprocal %65 {approx = true} : vector<2x1xf32> -> vector<2x1xf32>
    %67 = vector.broadcast %66 : vector<2x1xf32> to vector<2x1024xf32>
    %68 = arith.mulf %59, %67 : vector<2x1024xf32>
    %cst_24 = arith.constant 1.000000e+00 : f32
    %69 = vector.broadcast %cst_24 : f32 to vector<2x1024xf32>
    %70 = arith.mulf %69, %68 : vector<2x1024xf32>
    %71 = arith.addf %0, %70 : vector<2x1024xf32>
    %72 = arith.truncf %71 : vector<2x1024xf32> to vector<2x1024xbf16>
    %cst_25 = arith.constant dense<0.000000e+00> : vector<2x16xf32>
    %73 = tpu.matmul %72, %1, %cst_25 {dimension_numbers = #tpu.dot_dimension_numbers<[1], [0], [0], [1], [0, 0, 1, 1], [], []>} : vector<2x1024xbf16>, vector<1024x16xbf16>, vector<2x16xf32> -> vector<2x16xf32>
    %74 = vector.broadcast %3 : vector<1x16xf32> to vector<2x16xf32>
    %75 = arith.addf %73, %74 : vector<2x16xf32>
    %cst_26 = arith.constant dense<0xFF800000> : vector<2xf32>
    %76 = vector.multi_reduction <maximumf>, %75, %cst_26 [1] : vector<2x16xf32> to vector<2xf32>
    %77 = vector.shape_cast %76 : vector<2xf32> to vector<2x1xf32>
    %78 = vector.broadcast %77 : vector<2x1xf32> to vector<2x16xf32>
    %79 = arith.subf %75, %78 : vector<2x16xf32>
    %80 = math.exp %79 : vector<2x16xf32>
    %cst_27 = arith.constant dense<0.000000e+00> : vector<2xf32>
    %81 = vector.multi_reduction <add>, %80, %cst_27 [1] : vector<2x16xf32> to vector<2xf32>
    %82 = vector.shape_cast %81 : vector<2xf32> to vector<2x1xf32>
    %83 = tpu.reciprocal %82 {approx = true} : vector<2x1xf32> -> vector<2x1xf32>
    %84 = vector.broadcast %83 : vector<2x1xf32> to vector<2x16xf32>
    %85 = arith.mulf %80, %84 : vector<2x16xf32>
    %cst_28 = arith.constant 1.000000e-16 : f32
    %86 = vector.broadcast %cst_28 : f32 to vector<2x16xf32>
    %87 = arith.addf %85, %86 : vector<2x16xf32>
    %88 = math.log %87 : vector<2x16xf32>
    %cst_29 = arith.constant 0.000000e+00 : f32
    %89 = vector.broadcast %cst_29 : f32 to vector<2x16xf32>
    %90 = arith.cmpf ogt, %17, %89 : vector<2x16xf32>
    %91 = math.log %17 : vector<2x16xf32>
    %92 = arith.subf %91, %88 : vector<2x16xf32>
    %93 = arith.mulf %17, %92 : vector<2x16xf32>
    %cst_30 = arith.constant 0.000000e+00 : f32
    %94 = vector.broadcast %cst_30 : f32 to vector<2x16xf32>
    %95 = arith.select %90, %93, %94 : vector<2x16xi1>, vector<2x16xf32>
    %cst_31 = arith.constant dense<0.000000e+00> : vector<2xf32>
    %96 = vector.multi_reduction <add>, %95, %cst_31 [1] : vector<2x16xf32> to vector<2xf32>
    %97 = vector.shape_cast %96 : vector<2xf32> to vector<2x1xf32>
    %98 = tpu.iota {dimensions = array<i32: 0>} : vector<2x1xi32>
    %c2_i32 = arith.constant 2 : i32
    %99 = arith.muli %arg0, %c2_i32 : i32
    %100 = vector.broadcast %99 : i32 to vector<2x1xi32>
    %101 = arith.addi %98, %100 : vector<2x1xi32>
    %c2_i32_32 = arith.constant 2 : i32
    %102 = vector.broadcast %c2_i32_32 : i32 to vector<2x1xi32>
    %103 = arith.cmpi slt, %101, %102 : vector<2x1xi32>
    %cst_33 = arith.constant 0.000000e+00 : f32
    %104 = vector.broadcast %cst_33 : f32 to vector<2x1xf32>
    %105 = arith.select %103, %97, %104 : vector<2x1xi1>, vector<2x1xf32>
    %cst_34 = arith.constant dense<0.000000e+00> : vector<1xf32>
    %106 = vector.multi_reduction <add>, %105, %cst_34 [0] : vector<2x1xf32> to vector<1xf32>
    %107 = vector.shape_cast %106 : vector<1xf32> to vector<1x1xf32>
    %cst_35 = arith.constant 5.000000e-01 : f32
    %108 = vector.broadcast %cst_35 : f32 to vector<1x1xf32>
    %109 = arith.mulf %107, %108 : vector<1x1xf32>
    %c0_36 = arith.constant 0 : index
    %c0_37 = arith.constant 0 : index
    %110 = vector.load %arg6[%c0_36, %c0_37] : memref<1x1xf32, #tpu.memory_space<vmem>>, vector<1x1xf32>
    tpu.vector_store %arg6[%c0_36, %c0_37], %109 {strides = array<i32>} : memref<1x1xf32, #tpu.memory_space<vmem>>, vector<1x1xf32>,
    return
  }
  func.func @transform_0(%arg0: i32) -> (i32, i32) {
    %c0_i32 = arith.constant 0 : i32
    %c0_i32_0 = arith.constant 0 : i32
    return %arg0, %c0_i32 : i32, i32
  }
  func.func @transform_1(%arg0: i32) -> (i32, i32) {
    %c0_i32 = arith.constant 0 : i32
    %c0_i32_0 = arith.constant 0 : i32
    return %arg0, %c0_i32 : i32, i32
  }
  func.func @transform_2(%arg0: i32) -> (i32, i32) {
    %c0_i32 = arith.constant 0 : i32
    %c0_i32_0 = arith.constant 0 : i32
    %c0_i32_1 = arith.constant 0 : i32
    return %c0_i32, %c0_i32_0 : i32, i32
  }
  func.func @transform_3(%arg0: i32) -> (i32, i32) {
    %c0_i32 = arith.constant 0 : i32
    %c0_i32_0 = arith.constant 0 : i32
    %c0_i32_1 = arith.constant 0 : i32
    return %c0_i32, %c0_i32_0 : i32, i32
  }
  func.func @transform_4(%arg0: i32) -> (i32, i32) {
    %c0_i32 = arith.constant 0 : i32
    %c0_i32_0 = arith.constant 0 : i32
    %c0_i32_1 = arith.constant 0 : i32
    return %c0_i32, %c0_i32_0 : i32, i32
  }
  func.func @transform_5(%arg0: i32) -> (i32, i32) {
    %c0_i32 = arith.constant 0 : i32
    %c0_i32_0 = arith.constant 0 : i32
    return %arg0, %c0_i32 : i32, i32
  }
}

</mosaic_0001>

<bundles_post_ra>
// kernel: _vat_loss_impl.1
= control target key start
LH: loop header
LB: loop body
LE: loop exit
PB: predicated region body
PF: predicated region fallthrough
CT: control target
= control target key end

     0   :  { %v167_v21 = vlaneseq  ;;  %v2138_v26 = vmov 1983009808   ;;  %vm823_vm0 = vcmask 1041408   ;;  %s2859_s0 = inlined_call_operand.vmem [shape: f32[2,1024], index: 0, kind: input, shape index: {}]   ;;  %s2860_s1 = inlined_call_operand.vmem [shape: f32[2,1024], index: 1, kind: input, shape index: {}]   ;;  %s2861_s2 = inlined_call_operand.vmem [shape: bf16[1024,16], index: 2, kind: input, shape index: {}]   ;;  %s2862_s3 = inlined_call_operand.vmem [shape: bf16[16,1024], index: 3, kind: input, shape index: {}]   ;;  %s2863_s4 = inlined_call_operand.vmem [shape: f32[1,16], index: 4, kind: input, shape index: {}]   ;;  %s2864_s5 = inlined_call_operand.hbm [shape: f32[1,1], index: 5, kind: output, shape index: {}]  }
   0x1   :  { %v2175_v0 = vld [vmem:[%s2861_s2 + $0x78] sm:$0xff]   ;;  %v2198_v4 = vld [vmem:[%s2861_s2 + $0x70] sm:$0xff]   ;;  %v2222_v8 = vld [vmem:[%s2861_s2 + $0x68] sm:$0xff]   ;;  %v165_v27 = vunpack.c.l.s4 %v2138_v26 }
   0x2   :  { %v2180_v1 = vld [vmem:[%s2861_s2 + $0x38] sm:$0xff]   ;;  %1739 = vmatprep.subr.bf16.mxu0 %v2175_v0  ;;  %v2204_v5 = vld [vmem:[%s2861_s2 + $0x30] sm:$0xff]   ;;  %v2228_v9 = vld [vmem:[%s2861_s2 + $0x28] sm:$0xff]   ;;  %v2320_v28 = vshrl.u32 %v167_v21, 7 }
   0x3   :  { %v2186_v2 = vld [vmem:[%s2861_s2 + $0xf8] sm:$0xff]   ;;  %1740 = vmatpush3.bf16.msra.mxu0 %v2180_v1  ;;  %v2210_v6 = vld [vmem:[%s2861_s2 + $0xf0] sm:$0xff]   ;;  %v2234_v10 = vld [vmem:[%s2861_s2 + $0xe8] sm:$0xff]   ;;  %v166_v32 = vunpack.c.0.s8 %v165_v27 }
   0x4   :  { %v2192_v3 = vld [vmem:[%s2861_s2 + $0xb8] sm:$0xff]   ;;  %1761 = vmatprep.subr.bf16.mxu1 %v2186_v2  ;;  %1741 = vmatprep.subr.bf16.mxu0 %v2198_v4  ;;  %v2216_v7 = vld [vmem:[%s2861_s2 + $0xb0] sm:$0xff]   ;;  %v2240_v11 = vld [vmem:[%s2861_s2 + $0xa8] sm:$0xff]   ;;  %2900 = vst [vmem:[#allocation5_spill] sm:$0xff] %v2320_v28 }
   0x5   :  { %1762 = vmatpush3.bf16.msra.mxu1 %v2192_v3  ;;  %v2246_v12 = vld [vmem:[%s2861_s2 + $0x60] sm:$0xff]   ;;  %v2270_v16 = vld [vmem:[%s2861_s2 + $0x58] sm:$0xff]   ;;  %v2294_v20 = vld [vmem:[%s2861_s2 + $0x50] sm:$0xff]   ;;  %v2347_v36 = vsub.s32 %v166_v32, %v2320_v28 }
   0x6   :  { %1763 = vmatprep.subr.bf16.mxu1 %v2210_v6  ;;  %v2252_v13 = vld [vmem:[%s2861_s2 + $0x20] sm:$0xff]   ;;  %v2276_v17 = vld [vmem:[%s2861_s2 + $0x18] sm:$0xff]   ;;  %v2300_v22 = vld [vmem:[%s2861_s2 + $0x10] sm:$0xff]  }
   0x7   :  { %1742 = vmatpush3.bf16.msra.mxu0 %v2204_v5  ;;  %v2258_v14 = vld [vmem:[%s2861_s2 + $0xe0] sm:$0xff]   ;;  %v2282_v18 = vld [vmem:[%s2861_s2 + $0xd8] sm:$0xff]   ;;  %v2306_v23 = vld [vmem:[%s2861_s2 + $0xd0] sm:$0xff]  }
   0x8   :  { %1743 = vmatprep.subr.bf16.mxu0 %v2222_v8  ;;  %v2264_v15 = vld [vmem:[%s2861_s2 + $0xa0] sm:$0xff]   ;;  %v2288_v19 = vld [vmem:[%s2861_s2 + $0x98] sm:$0xff]   ;;  %v2317_v25 = vld [vmem:[%s2860_s1 + $0x8] sm:$0xff] }
   0x9   :  { %1764 = vmatpush3.bf16.msra.mxu1 %v2216_v7  ;;  %v2312_v24 = vld [vmem:[%s2860_s1] sm:$0xff]  ;;  %v2327_v30 = vld [vmem:[%s2861_s2 + $0x90] sm:$0xff]   ;;  %v2332_v31 = vld [vmem:[%s2861_s2 + $0x48] sm:$0xff]   ;;  %v778_v37 = vmul.f32 %v2317_v25, %v2317_v25 }
   0xa   :  { %1765 = vmatprep.subr.bf16.mxu1 %v2234_v10  ;;  %v777_v29 = vmul.f32 %v2312_v24, %v2312_v24  ;;  %v2338_v34 = vld [vmem:[%s2861_s2 + $0x8] sm:$0xff]   ;;  %v2361_v39 = vld [vmem:[%s2861_s2 + $0x40] sm:$0xff]   ;;  %v2399_v55 = vld [vmem:[%s2861_s2 + $0x178] sm:$0xff]  }
   0xb   :  { %1744 = vmatpush3.bf16.msra.mxu0 %v2228_v9  ;;  %v2344_v35 = vld [vmem:[%s2861_s2 + $0xc8] sm:$0xff]   ;;  %v2369_v42 = vld [vmem:[%s2861_s2] sm:$0xff]   ;;  %v798_v46 = vcombine.high %v778_v37, %v778_v37  ;;  %v805_v47 = vrot.slane %v778_v37, %v2347_v36  ;;  %v2410_v63 = vld [vmem:[%s2861_s2 + $0x1f8] sm:$0xff]  }
   0xc   :  { %1745 = vmatprep.subr.bf16.mxu0 %v2246_v12  ;;  %v781_v33 = vcombine.high %v777_v29, %v777_v29  ;;  %v2355_v38 = vld [vmem:[%s2861_s2 + $0x88] sm:$0xff]   ;;  %v788_v40 = vrot.slane %v777_v29, %v2347_v36  ;;  %v2375_v43 = vld [vmem:[%s2861_s2 + $0xc0] sm:$0xff]   ;;  %v2416_v32 = vld [vmem:[%s2861_s2 + $0x138] sm:$0xff]  }
   0xd   :  { %1766 = vmatpush3.bf16.msra.mxu1 %v2240_v11  ;;  %v2382_v48 = vld [vmem:[%s2861_s2 + $0x80] sm:$0xff]   ;;  %v812_v57 = vrot.slane %v798_v46, %v2347_v36  ;;  %v813_v58 = vcombine.high %v805_v47, %v805_v47  ;;  %v831_v21 = vsel %vm823_vm0, %v805_v47, 0.0  ;;  %v2428_v47 = vld [vmem:[%s2861_s2 + $0x1b8] sm:$0xff]  }
   0xe   :  { %1767 = vmatprep.subr.bf16.mxu1 %v2258_v14  ;;  %v795_v41 = vrot.slane %v781_v33, %v2347_v36  ;;  %v796_v44 = vcombine.high %v788_v40, %v788_v40  ;;  %v2387_v49 = vld [vmem:[%s2859_s0] sm:$0xff]  ;;  %v824_v50 = vsel %vm823_vm0, %v788_v40, 0.0 }
   0xf   :  { %1746 = vmatpush3.bf16.msra.mxu0 %v2252_v13  ;;  %v170_v54 = vrot.slane %v2387_v49, %v2347_v36  ;;  %v163_v56 = vcombine.high %v2387_v49, %v2387_v49  ;;  %v814_v37 = vcombine.high %v812_v57, %v812_v57  ;;  %v833_v40 = vsel %vm823_vm0, %v813_v58, 0.0  ;;  %v2453_v58 = vld [vmem:[%s2861_s2 + $0x1b0] sm:$0xff]  }
  0x10   :  { %1747 = vmatprep.subr.bf16.mxu0 %v2270_v16  ;;  %v797_v45 = vcombine.high %v795_v41, %v795_v41  ;;  %v825_v51 = vsel %vm823_vm0, %v796_v44, 0.0  ;;  %v827_v52 = vsel %vm823_vm0, %v795_v41, 0.0  ;;  %v2423_v44 = vld [vmem:[%s2861_s2 + $0x170] sm:$0xff]  }
  0x11   :  { %1768 = vmatpush3.bf16.msra.mxu1 %v2264_v15  ;;  %v826_v53 = vadd.f32 %v825_v51, %v824_v50  ;;  %v178_v61 = vcombine.high %v170_v54, %v170_v54  ;;  %v177_v62 = vrot.slane %v163_v56, %v2347_v36  ;;  %v205_v26 = vpack.c.bf16 %v170_v54, %v170_v54  ;;  %v2434_v51 = vld [vmem:[%s2861_s2 + $0x1f0] sm:$0xff]   ;;  %v2447_v56 = vld [vmem:[%s2861_s2 + $0x168] sm:$0xff]  }
  0x12   :  { %1769 = vmatprep.subr.bf16.mxu1 %v2282_v18  ;;  %v829_v59 = vsel %vm823_vm0, %v797_v45, 0.0  ;;  %v835_v50 = vsel %vm823_vm0, %v812_v57, 0.0  ;;  %v837_v54 = vsel %vm823_vm0, %v814_v37, 0.0  ;;  %v2507_v37 = vld [vmem:[%s2861_s2 + $0x1d8] sm:$0xff]  }
  0x13   :  { %1748 = vmatpush3.bf16.msra.mxu0 %v2276_v17  ;;  %v828_v60 = vadd.f32 %v827_v52, %v826_v53  ;;  %v206_v29 = vpack.c.bf16 %v178_v61, %v178_v61  ;;  %v179_v33 = vcombine.high %v177_v62, %v177_v62  ;;  %v207_v41 = vpack.c.bf16 %v177_v62, %v177_v62  ;;  %v2440_v53 = vld [vmem:[%s2861_s2 + $0x130] sm:$0xff]   ;;  %v2465_v61 = vld [vmem:[%s2861_s2 + $0x128] sm:$0xff]   ;;  %v2471_v62 = vld [vmem:[%s2861_s2 + $0x160] sm:$0xff]  }
  0x14   :  { %1749 = vmatprep.subr.bf16.mxu0 %v2294_v20  ;;  %2905 = vst [vmem:[#allocation10_spill] sm:$0xff] %v2507_v37 }
  0x15   :  { %1770 = vmatpush3.bf16.msra.mxu1 %v2288_v19  ;;  %v830_v27 = vadd.f32 %v829_v59, %v828_v60  ;;  %635 = vmatprep.mubr.bf16.mxu0 %v206_v29  ;;  %v208_v46 = vpack.c.bf16 %v179_v33, %v179_v33  ;;  %v2459_v59 = vld [vmem:[%s2861_s2 + $0x1e8] sm:$0xff]   ;;  %v2495_v29 = vld [vmem:[%s2861_s2 + $0x158] sm:$0xff]   ;;  %v2501_v33 = vld [vmem:[%s2861_s2 + $0x1a0] sm:$0xff]  }
  0x16   :  { %1771 = vmatprep.subr.bf16.mxu1 %v2306_v23  ;;  %2903 = vst [vmem:[#allocation8_spill] sm:$0xff] %v2495_v29  ;;  %2904 = vst [vmem:[#allocation9_spill] sm:$0xff] %v2501_v33 }
  0x17   :  { %1750 = vmatpush3.bf16.msra.mxu0 %v2300_v22  ;;  %v832_v45 = vadd.f32 %v831_v21, %v830_v27  ;;  %675 = vmatprep.mubr.bf16.mxu1 %v208_v46  ;;  %v2477_v21 = vld [vmem:[%s2861_s2 + $0x1a8] sm:$0xff]   ;;  %v2489_v27 = vld [vmem:[%s2861_s2 + $0x120] sm:$0xff]   ;;  %v2531_v46 = vld [vmem:[%s2861_s2 + $0x1d0] sm:$0xff]  }
  0x18   :  { %1751 = vmatprep.subr.bf16.mxu0 %v2332_v31  ;;  %2902 = vst [vmem:[#allocation7_spill] sm:$0xff] %v2489_v27  ;;  %2909 = vst [vmem:[#allocation14_spill] sm:$0xff] %v2531_v46 }
  0x19   :  { %1772 = vmatpush3.bf16.msra.mxu1 %v2327_v30  ;;  %v834_v52 = vadd.f32 %v833_v40, %v832_v45  ;;  %v2513_v40 = vld [vmem:[%s2861_s2 + $0x118] sm:$0xff]  }
  0x1a   :  { %1773 = vmatprep.subr.bf16.mxu1 %v2344_v35  ;;  %2906 = vst [vmem:[#allocation11_spill] sm:$0xff] %v2513_v40  ;;  %v2525_v45 = vld [vmem:[%s2861_s2 + $0x198] sm:$0xff]  }
  0x1b   :  { %1752 = vmatpush3.bf16.msra.mxu0 %v2338_v34  ;;  %v836_v57 = vadd.f32 %v835_v50, %v834_v52  ;;  %2908 = vst [vmem:[#allocation13_spill] sm:$0xff] %v2525_v45  ;;  %v2537_v50 = vld [vmem:[%s2861_s2 + $0x110] sm:$0xff]   ;;  %v2543_v52 = vld [vmem:[%s2861_s2 + $0x148] sm:$0xff]  }
  0x1c   :  { %1753 = vmatprep.subr.bf16.mxu0 %v2361_v39  ;;  %2910 = vst [vmem:[#allocation15_spill] sm:$0xff] %v2537_v50  ;;  %2911 = vst [vmem:[#allocation16_spill] sm:$0xff] %v2543_v52 }
  0x1d   :  { %1774 = vmatpush3.bf16.msra.mxu1 %v2355_v38  ;;  %v838_v60 = vadd.f32 %v837_v54, %v836_v57  ;;  %v2549_v54 = vld [vmem:[%s2861_s2 + $0x190] sm:$0xff]   ;;  %v2555_v57 = vld [vmem:[%s2861_s2 + $0x1c8] sm:$0xff]  }
  0x1e   :  { %1775 = vmatprep.subr.bf16.mxu1 %v2375_v43  ;;  %2912 = vst [vmem:[#allocation17_spill] sm:$0xff] %v2549_v54  ;;  %2913 = vst [vmem:[#allocation18_spill] sm:$0xff] %v2555_v57 }
  0x1f   :  { %1754 = vmatpush3.bf16.msra.mxu0 %v2369_v42  ;;  %839 = vadd.xlane.f32.xlu0 %v838_v60  ;;  %v2561_v60 = vld [vmem:[%s2861_s2 + $0x108] sm:$0xff]  }
  0x20   :  { %1783 = vmatprep.subr.bf16.mxu0 %v2399_v55  ;;  %2914 = vst [vmem:[#allocation19_spill] sm:$0xff] %v2561_v60 }
  0x21   :  { %1776 = vmatpush3.bf16.msra.mxu1 %v2382_v48 }
  0x22   :  { %1805 = vmatprep.subr.bf16.mxu1 %v2410_v63  ;;  %636 = vmatmul.mubr.bf16.vlgmr.msra.gmra.mxu0 %v205_v26  ;;  %v2483_v26 = vld [vmem:[%s2861_s2 + $0x1e0] sm:$0xff]  }
  0x23   :  { %1784 = vmatpush3.bf16.msra.mxu0 %v2416_v32  ;;  %2901 = vst [vmem:[#allocation6_spill] sm:$0xff] %v2483_v26 }
  0x24   :  { %676 = vmatmul.mubr.bf16.vlgmr.msra.gmra.mxu1 %v207_v41  ;;  %1785 = vmatprep.subr.bf16.mxu0 %v2423_v44  ;;  %v2519_v41 = vld [vmem:[%s2861_s2 + $0x150] sm:$0xff]  }
  0x25   :  { %1806 = vmatpush3.bf16.msra.mxu1 %v2428_v47  ;;  %2907 = vst [vmem:[#allocation12_spill] sm:$0xff] %v2519_v41 }
  0x26   :  { %1807 = vmatprep.subr.bf16.mxu1 %v2434_v51 }
  0x27   :  { %1786 = vmatpush3.bf16.msra.mxu0 %v2440_v53 }
  0x28   :  { %1787 = vmatprep.subr.bf16.mxu0 %v2447_v56 }
  0x29   :  { %1808 = vmatpush3.bf16.msra.mxu1 %v2453_v58 }
  0x2a   :  { %1809 = vmatprep.subr.bf16.mxu1 %v2459_v59 }
  0x2b   :  { %1788 = vmatpush3.bf16.msra.mxu0 %v2465_v61 }
  0x2c   :  { %1789 = vmatprep.subr.bf16.mxu0 %v2471_v62 }
  0x2d   :  { %1810 = vmatpush3.bf16.msra.mxu1 %v2477_v21 }
  0x2e   :  { %1811 = vmatprep.subr.bf16.mxu1 %v2483_v26 }
  0x2f   :  { %1790 = vmatpush3.bf16.msra.mxu0 %v2489_v27 }
  0x30   :  { %1791 = vmatprep.subr.bf16.mxu0 %v2495_v29 }
  0x31   :  { %1812 = vmatpush3.bf16.msra.mxu1 %v2501_v33 }
  0x32   :  { %1813 = vmatprep.subr.bf16.mxu1 %v2507_v37 }
  0x33   :  { %1792 = vmatpush3.bf16.msra.mxu0 %v2513_v40 }
  0x34   :  { %1793 = vmatprep.subr.bf16.mxu0 %v2519_v41 }
  0x35   :  { %1814 = vmatpush3.bf16.msra.mxu1 %v2525_v45  ;;  %v2567_v45 = vld [vmem:[%s2861_s2 + $0x140] sm:$0xff]  }
  0x36   :  { %1815 = vmatprep.subr.bf16.mxu1 %v2531_v46  ;;  %2915 = vst [vmem:[#allocation20_spill] sm:$0xff] %v2567_v45  ;;  %v2573_v46 = vld [vmem:[%s2861_s2 + $0x188] sm:$0xff]  }
  0x37   :  { %1794 = vmatpush3.bf16.msra.mxu0 %v2537_v50  ;;  %2916 = vst [vmem:[#allocation21_spill] sm:$0xff] %v2573_v46  ;;  %v2578_v50 = vld [vmem:[%s2859_s0 + $0x8] sm:$0xff] }
  0x38   :  { %1795 = vmatprep.subr.bf16.mxu0 %v2543_v52  ;;  %v2584_v52 = vld [vmem:[%s2861_s2 + $0x1c0] sm:$0xff]   ;;  %v180_v41 = vcombine.high %v2578_v50, %v2578_v50 }
  0x39   :  { %1816 = vmatpush3.bf16.msra.mxu1 %v2549_v54  ;;  %2917 = vst [vmem:[#allocation22_spill] sm:$0xff] %v2584_v52  ;;  %v187_v54 = vrot.slane %v2578_v50, %v2347_v36 }
  0x3a   :  { %1817 = vmatprep.subr.bf16.mxu1 %v2555_v57 }
  0x3b   :  { %10 = vsyncpa [#allocation3], 0  ;;  %1796 = vmatpush3.bf16.msra.mxu0 %v2561_v60  ;;  %v2594_v40 = vld [vmem:[%s2861_s2 + $0x100] sm:$0xff]   ;;  %v195_v57 = vcombine.high %v187_v54, %v187_v54  ;;  %v194_v37 = vrot.slane %v180_v41, %v2347_v36  ;;  %v209_v29 = vpack.c.bf16 %v187_v54, %v187_v54  ;;  %vm763_vm3 = vcmask 123904  }
  0x3c   :  { %2918 = vst [vmem:[#allocation23_spill] sm:$0xff] %v2594_v40  ;;  %1797 = vmatprep.subr.bf16.mxu0 %v2567_v45  ;;  %v2602_v33 = vld [vmem:[%s2861_s2 + $0x180] sm:$0xff]   ;;  %vm1140_vm4 = vcmask 130048   ;;  %vm1646_vm9 = vcmask 0  }
  0x3d   :  { %1818 = vmatpush3.bf16.msra.mxu1 %v2573_v46  ;;  %2919 = vst [vmem:[#allocation24_spill] sm:$0xff] %v2602_v33  ;;  %v210_v60 = vpack.c.bf16 %v195_v57, %v195_v57  ;;  %v196_v27 = vcombine.high %v194_v37, %v194_v37  ;;  %v211_v45 = vpack.c.bf16 %v194_v37, %v194_v37 }
  0x3e   :  { %1819 = vmatprep.subr.bf16.mxu1 %v2584_v52 }
  0x3f   :  { %1798 = vmatpush3.bf16.msra.mxu0 %v2594_v40  ;;  %715 = vmatprep.mubr.bf16.mxu0 %v210_v60  ;;  %v212_v26 = vpack.c.bf16 %v196_v27, %v196_v27 }
  0x40   :  { %1827 = vmatprep.subr.bf16.mxu0 %v2175_v0 }
  0x41   :  { %1820 = vmatpush3.bf16.msra.mxu1 %v2602_v33  ;;  %755 = vmatprep.mubr.bf16.mxu1 %v212_v26 }
  0x42   :  { %716 = vmatmul.mubr.bf16.vlgmr.msra.gmra.mxu0 %v209_v29  ;;  %1849 = vmatprep.subr.bf16.mxu1 %v2186_v2 }
  0x43   :  { %1828 = vmatpush3.bf16.msra.mxu0 %v2180_v1 }
  0x44   :  { %756 = vmatmul.mubr.bf16.vlgmr.msra.gmra.mxu1 %v211_v45  ;;  %1829 = vmatprep.subr.bf16.mxu0 %v2198_v4 }
  0x45   :  { %1850 = vmatpush3.bf16.msra.mxu1 %v2192_v3 }
  0x46   :  { %1851 = vmatprep.subr.bf16.mxu1 %v2210_v6 }
  0x47   :  { %1830 = vmatpush3.bf16.msra.mxu0 %v2204_v5 }
  0x48   :  { %1831 = vmatprep.subr.bf16.mxu0 %v2222_v8 }
  0x49   :  { %1852 = vmatpush3.bf16.msra.mxu1 %v2216_v7  ;;  %v2139_v7 = vmov 269488144  }
  0x4a   :  { %1853 = vmatprep.subr.bf16.mxu1 %v2234_v10  ;;  %v852_v8 = vunpack.c.l.s4 %v2139_v7 }
  0x4b   :  { %1832 = vmatpush3.bf16.msra.mxu0 %v2228_v9 }
  0x4c   :  { %1833 = vmatprep.subr.bf16.mxu0 %v2246_v12  ;;  %v853_v9 = vunpack.c.0.s8 %v852_v8 }
  0x4d   :  { %1854 = vmatpush3.bf16.msra.mxu1 %v2240_v11 }
  0x4e   :  { %1855 = vmatprep.subr.bf16.mxu1 %v2258_v14  ;;  %v856_v10 = vsub.s32 %v853_v9, %v2320_v28 }
  0x4f   :  { %1834 = vmatpush3.bf16.msra.mxu0 %v2252_v13 }
  0x50   :  { %1835 = vmatprep.subr.bf16.mxu0 %v2270_v16 }
  0x51   :  { %1856 = vmatpush3.bf16.msra.mxu1 %v2264_v15 }
  0x52   :  { %1857 = vmatprep.subr.bf16.mxu1 %v2282_v18 }
  0x53   :  { %1836 = vmatpush3.bf16.msra.mxu0 %v2276_v17 }
  0x54   :  { %1837 = vmatprep.subr.bf16.mxu0 %v2294_v20 }
  0x55   :  { %1858 = vmatpush3.bf16.msra.mxu1 %v2288_v19 }
  0x56   :  { %1859 = vmatprep.subr.bf16.mxu1 %v2306_v23 }
  0x57   :  { %1838 = vmatpush3.bf16.msra.mxu0 %v2300_v22 }
  0x58   :  { %1839 = vmatprep.subr.bf16.mxu0 %v2332_v31 }
  0x59   :  { %1860 = vmatpush3.bf16.msra.mxu1 %v2327_v30 }
  0x5a   :  { %1861 = vmatprep.subr.bf16.mxu1 %v2344_v35 }
  0x5b   :  { %1840 = vmatpush3.bf16.msra.mxu0 %v2338_v34 }
  0x5c   :  { %1841 = vmatprep.subr.bf16.mxu0 %v2361_v39 }
  0x5d   :  { %1862 = vmatpush3.bf16.msra.mxu1 %v2355_v38 }
  0x5e   :  { %1863 = vmatprep.subr.bf16.mxu1 %v2375_v43 }
  0x5f   :  { %1842 = vmatpush3.bf16.msra.mxu0 %v2369_v42 }
  0x60   :  { %1871 = vmatprep.subr.bf16.mxu0 %v2399_v55 }
  0x61   :  { %1864 = vmatpush3.bf16.msra.mxu1 %v2382_v48 }
  0x62   :  { %1893 = vmatprep.subr.bf16.mxu1 %v2410_v63 }
  0xa8   :  { %v840_v0 = vpop.xlane.xlu0 %839 }
  0xa9   :  { %2073 = vrsqrt.f32 %v840_v0  ;;  %vm843_vm1 = vcmp.eq.f32.partialorder %v840_v0, inf  ;;  %v846_v3 = vand.u32 2147483648, %v840_v0  ;;  %vm845_vm2 = vcmp.eq.f32.partialorder %v840_v0, 0.0 }
  0xb6   :  { %v2074_v1 = vpop.eup %2073 }
  0xb7   :  { %v842_v2 = vmul.f32 %v2074_v1, %v840_v0 }
  0xb9   :  { %v844_v4 = vsel %vm843_vm1, %v840_v0, %v842_v2 }
  0xba   :  { %v847_v5 = vsel %vm845_vm2, %v846_v3, %v844_v4 }
  0xbb   :  { %v848_v6 = vadd.f32 1e-08, %v847_v5 }
  0xbd   :  { %2075 = vrcp.f32 %v848_v6 }
  0xca   :  { %v2076_v11 = vpop.eup %2075 }
  0xcb   :  { %v857_v12 = vrot.slane %v2076_v11, %v856_v10 }
  0xcd   :  { %v859_v13 = vmul.f32 %v857_v12, %v2312_v24  ;;  %v860_v14 = vmul.f32 %v857_v12, %v2317_v25 }
  0xcf   :  { %v861_v15 = vmul.f32 10.0, %v859_v13  ;;  %v862_v26 = vmul.f32 10.0, %v860_v14 }
  0xd1   :  { %v863_v27 = vadd.f32 %v861_v15, %v2387_v49  ;;  %v864_v29 = vadd.f32 %v862_v26, %v2578_v50  ;;  %v2920_v15 = vld [vmem:[#allocation6_spill] sm:$0xff]  ;;  %v2921_v26 = vld [vmem:[#allocation7_spill] sm:$0xff] }
  0xd3   :  { %v874_v37 = vrot.slane %v863_v27, %v2347_v36  ;;  %v867_v41 = vcombine.high %v863_v27, %v863_v27  ;;  %v2648_v45 = vrot.slane %v864_v29, %v2347_v36  ;;  %v884_v54 = vcombine.high %v864_v29, %v864_v29  ;;  %v2922_v27 = vld [vmem:[#allocation8_spill] sm:$0xff]  ;;  %v2923_v29 = vld [vmem:[#allocation9_spill] sm:$0xff] }
  0xd5   :  { %v882_v57 = vcombine.high %v874_v37, %v874_v37  ;;  %v881_v60 = vrot.slane %v867_v41, %v2347_v36  ;;  %v899_v24 = vcombine.high %v2648_v45, %v2648_v45  ;;  %v2654_v25 = vrot.slane %v884_v54, %v2347_v36  ;;  %v2925_v41 = vld [vmem:[#allocation11_spill] sm:$0xff]  ;;  %v2926_v54 = vld [vmem:[#allocation12_spill] sm:$0xff] }
  0xd6   :  { %v909_v1 = vpack.c.bf16 %v874_v37, %v874_v37  ;;  %v2924_v37 = vld [vmem:[#allocation10_spill] sm:$0xff] }
  0xd7   :  { %v910_v0 = vpack.c.bf16 %v882_v57, %v882_v57  ;;  %v883_v49 = vcombine.high %v881_v60, %v881_v60  ;;  %v900_v2 = vcombine.high %v2654_v25, %v2654_v25  ;;  %v914_v5 = vpack.c.bf16 %v899_v24, %v899_v24  ;;  %v2927_v57 = vld [vmem:[#allocation13_spill] sm:$0xff]  ;;  %v2929_v24 = vld [vmem:[#allocation15_spill] sm:$0xff] }
  0xd8   :  { %v911_v6 = vpack.c.bf16 %v881_v60, %v881_v60  ;;  %v2928_v60 = vld [vmem:[#allocation14_spill] sm:$0xff] }
  0xd9   :  { %949 = vmatprep.mubr.bf16.mxu0 %v910_v0  ;;  %v912_v4 = vpack.c.bf16 %v883_v49, %v883_v49  ;;  %v916_v9 = vpack.c.bf16 %v900_v2, %v900_v2  ;;  %v2930_v0 = vld [vmem:[#allocation16_spill] sm:$0xff]  ;;  %v2931_v49 = vld [vmem:[#allocation17_spill] sm:$0xff]  ;;  %v2932_v2 = vld [vmem:[#allocation18_spill] sm:$0xff] }
  0xda   :  { %950 = vmatmul.mubr.bf16.vlgmr.msra.gmra.mxu0 %v909_v1 }
  0xdb   :  { %1872 = vmatpush3.bf16.msra.mxu0 %v2416_v32  ;;  %989 = vmatprep.mubr.bf16.mxu1 %v912_v4  ;;  %v2685_v4 = vld [vmem:[%s2863_s4] ss:$0 sm:$0xff] }
  0xdc   :  { %1029 = vmatprep.mubr.bf16.mxu0 %v914_v5  ;;  %990 = vmatmul.mubr.bf16.vlgmr.msra.gmra.mxu1 %v911_v6  ;;  %v2933_v5 = vld [vmem:[#allocation19_spill] sm:$0xff]  ;;  %v2934_v6 = vld [vmem:[#allocation20_spill] sm:$0xff] }
  0xdd   :  { %1894 = vmatpush3.bf16.msra.mxu1 %v2428_v47  ;;  %1873 = vmatprep.subr.bf16.mxu0 %v2423_v44 }
  0xde   :  { %1069 = vmatprep.mubr.bf16.mxu1 %v916_v9  ;;  %1895 = vmatprep.subr.bf16.mxu1 %v2434_v51 }
  0xdf   :  { %1874 = vmatpush3.bf16.msra.mxu0 %v2440_v53 }
  0xe0   :  { %1875 = vmatprep.subr.bf16.mxu0 %v2447_v56 }
  0xe1   :  { %1896 = vmatpush3.bf16.msra.mxu1 %v2453_v58 }
  0xe2   :  { %v1755_v3 = vpop.f32.mrf.mxu0  ;;  %1897 = vmatprep.subr.bf16.mxu1 %v2459_v59 }
  0xe3   :  { %1876 = vmatpush3.bf16.msra.mxu0 %v2465_v61 }
  0xe4   :  { %v1756_v7 = vpop.f32.mrf.mxu0  ;;  %v1777_v8 = vpop.f32.mrf.mxu1  ;;  %1877 = vmatprep.subr.bf16.mxu0 %v2471_v62 }
  0xe5   :  { %1898 = vmatpush3.bf16.msra.mxu1 %v2477_v21  ;;  %v1757_v1 = vadd.f32 %v1756_v7, %v1755_v3  ;;  %v913_v3 = vpack.c.bf16 %v2648_v45, %v2648_v45 }
  0xe6   :  { %v1758_v10 = vpop.f32.mrf.mxu0  ;;  %v1778_v11 = vpop.f32.mrf.mxu1  ;;  %1899 = vmatprep.subr.bf16.mxu1 %v2920_v15 }
  0xe7   :  { %1878 = vmatpush3.bf16.msra.mxu0 %v2921_v26  ;;  %v638_v9 = vadd.f32 %v1757_v1, %v2685_v4  ;;  %v1779_v10 = vadd.f32 %v1778_v11, %v1777_v8 }
  0xe8   :  { %v1759_v12 = vpop.f32.mrf.mxu0  ;;  %v1780_v13 = vpop.f32.mrf.mxu1  ;;  %1879 = vmatprep.subr.bf16.mxu0 %v2922_v27 }
  0xe9   :  { %1900 = vmatpush3.bf16.msra.mxu1 %v2923_v29  ;;  %v678_v12 = vadd.f32 %v1779_v10, %v638_v9  ;;  %v915_v13 = vpack.c.bf16 %v2654_v25, %v2654_v25 }
  0xea   :  { %v1781_v14 = vpop.f32.mrf.mxu1  ;;  %1901 = vmatprep.subr.bf16.mxu1 %v2924_v37 }
  0xeb   :  { %1880 = vmatpush3.bf16.msra.mxu0 %v2925_v41 }
  0xec   :  { %1881 = vmatprep.subr.bf16.mxu0 %v2926_v54 }
  0xed   :  { %1902 = vmatpush3.bf16.msra.mxu1 %v2927_v57 }
  0xee   :  { %1903 = vmatprep.subr.bf16.mxu1 %v2928_v60 }
  0xef   :  { %1882 = vmatpush3.bf16.msra.mxu0 %v2929_v24 }
  0xf0   :  { %1883 = vmatprep.subr.bf16.mxu0 %v2930_v0 }
  0xf1   :  { %1904 = vmatpush3.bf16.msra.mxu1 %v2931_v49 }
  0xf2   :  { %1905 = vmatprep.subr.bf16.mxu1 %v2932_v2 }
  0xf3   :  { %1884 = vmatpush3.bf16.msra.mxu0 %v2933_v5 }
  0xf4   :  { %1885 = vmatprep.subr.bf16.mxu0 %v2934_v6 }
  0xf5   :  { %1906 = vmatpush3.bf16.msra.mxu1 %v2573_v46 }
  0xf6   :  { %1907 = vmatprep.subr.bf16.mxu1 %v2584_v52 }
  0xf7   :  { %1886 = vmatpush3.bf16.msra.mxu0 %v2594_v40 }
  0xf9   :  { %1908 = vmatpush3.bf16.msra.mxu1 %v2602_v33 }
  0xfa   :  { %1030 = vmatmul.mubr.bf16.vlgmr.msra.gmra.mxu0 %v913_v3 }
  0xfc   :  { %1070 = vmatmul.mubr.bf16.vlgmr.msra.gmra.mxu1 %v915_v13 }
 0x102   :  { %v1799_v7 = vpop.f32.mrf.mxu0 }
 0x104   :  { %v1800_v14 = vpop.f32.mrf.mxu0  ;;  %v1821_v28 = vpop.f32.mrf.mxu1 }
 0x105   :  { %v1801_v46 = vadd.f32 %v1800_v14, %v1799_v7 }
 0x106   :  { %v1822_v8 = vpop.f32.mrf.mxu1  ;;  %v1802_v11 = vpop.f32.mrf.mxu0 }
 0x107   :  { %v718_v1 = vadd.f32 %v1801_v46, %v678_v12  ;;  %v1823_v52 = vadd.f32 %v1822_v8, %v1821_v28 }
 0x108   :  { %v1803_v40 = vpop.f32.mrf.mxu0  ;;  %v1824_v6 = vpop.f32.mrf.mxu1 }
 0x109   :  { %v758_v45 = vadd.f32 %v1823_v52, %v718_v1 }
 0x10a   :  { %v1825_v5 = vpop.f32.mrf.mxu1 }
 0x10b   :  { %v764_v33 = vsel %vm763_vm3, %v758_v45, -inf }
 0x10c   :  { %765 = vmax.xlane.f32.xlu1 %v764_v33 }
 0x195   :  { %v766_v14 = vpop.xlane.xlu1 %765 }
 0x196   :  { %v767_v11 = vsub.f32 %v758_v45, %v766_v14 }
 0x198   :  { %v768_v46 = vmul.f32 1.442695, %v767_v11 }
 0x19a   :  { %v1843_v9 = vpop.f32.mrf.mxu0  ;;  %2077 = vpow2.f32 %v768_v46 }
 0x19c   :  { %v1844_v10 = vpop.f32.mrf.mxu0  ;;  %v1865_v3 = vpop.f32.mrf.mxu1 }
 0x19d   :  { %v1845_v28 = vadd.f32 %v1844_v10, %v1843_v9 }
 0x19e   :  { %v1846_v25 = vpop.f32.mrf.mxu0  ;;  %v1866_v2 = vpop.f32.mrf.mxu1 }
 0x19f   :  { %v952_v40 = vadd.f32 %v1845_v28, %v2685_v4  ;;  %v1867_v52 = vadd.f32 %v1866_v2, %v1865_v3 }
 0x1a0   :  { %v1847_v49 = vpop.f32.mrf.mxu0  ;;  %v1868_v7 = vpop.f32.mrf.mxu1 }
 0x1a1   :  { %v992_v33 = vadd.f32 %v1867_v52, %v952_v40 }
 0x1a2   :  { %v1869_v13 = vpop.f32.mrf.mxu1 }
 0x1a7   :  { %v2078_v9 = vpop.eup %2077 }
 0x1a8   :  { %v770_v10 = vsel %vm763_vm3, %v2078_v9, 0.0 }
 0x1ba   :  { %v1887_v5 = vpop.f32.mrf.mxu0 }
 0x1bc   :  { %v1888_v6 = vpop.f32.mrf.mxu0  ;;  %v1909_v12 = vpop.f32.mrf.mxu1 }
 0x1bd   :  { %v1889_v8 = vadd.f32 %v1888_v6, %v1887_v5 }
 0x1be   :  { %v1890_v1 = vpop.f32.mrf.mxu0  ;;  %v1910_v0 = vpop.f32.mrf.mxu1 }
 0x1bf   :  { %v1032_v25 = vadd.f32 %v1889_v8, %v992_v33  ;;  %v1911_v24 = vadd.f32 %v1910_v0, %v1909_v12 }
 0x1c0   :  { %v1891_v49 = vpop.f32.mrf.mxu0  ;;  %v1912_v7 = vpop.f32.mrf.mxu1 }
 0x1c1   :  { %v1072_v13 = vadd.f32 %v1911_v24, %v1032_v25  ;;  %v152_v24 = vld [vmem:[%s2862_s3] sm:$0xff] }
 0x1c2   :  { %v1913_v60 = vpop.f32.mrf.mxu1 }
 0x1c3   :  { %v1077_v45 = vsel %vm763_vm3, %v1072_v13, -inf  ;;  %v156_v60 = vld [vmem:[%s2862_s3 + $0x20] sm:$0xff] }
 0x1c4   :  { %1078 = vmax.xlane.f32.xlu0 %v1077_v45  ;;  %v1727_v0 = vcombine.low %v152_v24, %v156_v60  ;;  %v1728_v28 = vcombine.high %v152_v24, %v156_v60 }
 0x1c6   :  { %1158 = vmatprep.subr.bf16.mxu0 %v1728_v28  ;;  %v159_v28 = vld [vmem:[%s2862_s3 + $0x38] sm:$0xff] }
 0x1c7   :  { %1159 = vmatpush1.bf16.msra.mxu0 %v1727_v0  ;;  %v155_v0 = vld [vmem:[%s2862_s3 + $0x18] sm:$0xff] }
 0x1c8   :  { %771 = vadd.xlane.f32.xlu0 %v770_v10  ;;  %v153_v10 = vld [vmem:[%s2862_s3 + $0x8] sm:$0xff] }
 0x24d   :  { %v1079_v2 = vpop.xlane.xlu0 %1078 }
 0x24e   :  { %v1080_v3 = vsub.f32 %v1072_v13, %v1079_v2  ;;  %v157_v2 = vld [vmem:[%s2862_s3 + $0x28] sm:$0xff] }
 0x250   :  { %v1081_v14 = vmul.f32 1.442695, %v1080_v3  ;;  %v1730_v3 = vcombine.high %v153_v10, %v157_v2 }
 0x251   :  { %v772_v52 = vpop.xlane.xlu0 %771 }
 0x252   :  { %2079 = vpow2.f32 %v1081_v14  ;;  %1199 = vmatprep.subr.bf16.mxu1 %v1730_v3  ;;  %v154_v14 = vld [vmem:[%s2862_s3 + $0x10] sm:$0xff]  ;;  %v2107_v3 = vld [vmem:[%s2861_s2 + $0x68] sm:$0xff]  }
 0x25f   :  { %v2080_v11 = vpop.eup %2079 }
 0x260   :  { %v1083_v46 = vsel %vm763_vm3, %v2080_v11, 0.0 }
 0x261   :  { %1084 = vadd.xlane.f32.xlu1 %v1083_v46  ;;  %v2140_v46 = vmov 0  }
 0x262   :  { %1176 = vmatprep.mubr.bf16.mxu0 %v2140_v46  ;;  %1217 = vmatprep.mubr.bf16.mxu1 %v2140_v46 }
 0x2ea   :  { %v1085_v40 = vpop.xlane.xlu1 %1084 }
 0x2eb   :  { %2081 = vrcp.f32 %v1085_v40  ;;  %v1733_v40 = vcombine.low %v155_v0, %v159_v28 }
 0x2ec   :  { %2083 = vrcp.f32 %v772_v52  ;;  %v1734_v52 = vcombine.high %v155_v0, %v159_v28  ;;  %v2114_v0 = vld [vmem:[%s2861_s2 + $0xa0] sm:$0xff]  }
 0x2f8   :  { %v2082_v5 = vpop.eup %2081 }
 0x2f9   :  { %v1087_v6 = vmul.f32 %v2082_v5, %v2080_v11  ;;  %v2084_v33 = vpop.eup %2083  ;;  %v158_v11 = vld [vmem:[%s2862_s3 + $0x30] sm:$0xff] }
 0x2fa   :  { %v2709_v8 = vmul.f32 %v2084_v33, %v2078_v9  ;;  %v1729_v9 = vcombine.low %v153_v10, %v157_v2  ;;  %v1731_v24 = vcombine.low %v154_v14, %v158_v11  ;;  %v1732_v60 = vcombine.high %v154_v14, %v158_v11  ;;  %v2105_v10 = vld [vmem:[%s2861_s2 + $0x30] sm:$0xff]   ;;  %v2109_v14 = vld [vmem:[%s2861_s2 + $0x28] sm:$0xff]  }
 0x2fb   :  { %v1089_v12 = vadd.f32 1e-16, %v1087_v6  ;;  %v2106_v2 = vld [vmem:[%s2861_s2 + $0xb0] sm:$0xff]   ;;  %v2110_v11 = vld [vmem:[%s2861_s2 + $0xa8] sm:$0xff]  }
 0x2fc   :  { %v1088_v1 = vmul.f32 %v1087_v6, %v2709_v8  ;;  %1200 = vmatpush1.bf16.msra.mxu1 %v1729_v9  ;;  %1240 = vmatprep.subr.bf16.mxu0 %v1732_v60  ;;  %v2108_v9 = vld [vmem:[%s2861_s2 + $0xe8] sm:$0xff]   ;;  %v2113_v60 = vld [vmem:[%s2861_s2 + $0x20] sm:$0xff]   ;;  %vm1622_vm7 = vcmp.gt.f32.partialorder %v2709_v8, 0.0 }
 0x2fd   :  { %2085 = vrcp.f32 %v1089_v12  ;;  %1281 = vmatprep.subr.bf16.mxu1 %v1734_v52 }
 0x30a   :  { %v2086_v25 = vpop.eup %2085 }
 0x30b   :  { %v1091_v49 = vmul.f32 %v2086_v25, %v1088_v1  ;;  %v2099_v25 = vld [vmem:[%s2861_s2 + $0x78] sm:$0xff]  }
 0x30d   :  { %v1092_v7 = vsub.f32 0.0, %v1091_v49  ;;  %v2100_v49 = vld [vmem:[%s2861_s2 + $0xf8] sm:$0xff]  }
 0x30f   :  { %v1093_v13 = vmul.f32 5.0, %v1092_v7  ;;  %v2102_v7 = vld [vmem:[%s2861_s2 + $0xb8] sm:$0xff]  }
 0x311   :  { %v1094_v45 = vsel %vm763_vm3, %v1093_v13, 0.0 }
 0x312   :  { %1095 = vadd.xlane.f32.xlu1 %v1094_v45  ;;  %v2104_v45 = vld [vmem:[%s2861_s2 + $0xf0] sm:$0xff]  }
 0x39b   :  { %v1096_v5 = vpop.xlane.xlu1 %1095 }
 0x39c   :  { %v1097_v12 = vmul.f32 %v1096_v5, %v1087_v6  ;;  %v2101_v6 = vld [vmem:[%s2861_s2 + $0x38] sm:$0xff]  }
 0x39e   :  { %v1098_v33 = vsub.f32 %v1093_v13, %v1097_v12  ;;  %v2103_v13 = vld [vmem:[%s2861_s2 + $0x70] sm:$0xff]  }
 0x3a0   :  { %v1099_v1 = vpack.c.bf16 %v1098_v33, %v1098_v33 }
 0x3a2   :  { %1735 = vmatmul.mubr.msk.bf16.vlgmr.msra.gmra.mxu0 %vm1140_vm4, %v1099_v1  ;;  %1736 = vmatmul.mubr.msk.bf16.vlgmr.msra.gmra.mxu1 %vm1140_vm4, %v1099_v1 }
 0x3a3   :  { %1241 = vmatpush1.bf16.msra.mxu0 %v1731_v24  ;;  %1282 = vmatpush1.bf16.msra.mxu1 %v1733_v40  ;;  %v2112_v24 = vld [vmem:[%s2861_s2 + $0xe0] sm:$0xff]  }
 0x3a4   :  { %1258 = vmatprep.mubr.bf16.mxu0 %v2140_v46  ;;  %1299 = vmatprep.mubr.bf16.mxu1 %v2140_v46  ;;  %v2111_v46 = vld [vmem:[%s2861_s2 + $0x60] sm:$0xff]  }
 0x3a5   :  { %1915 = vmatprep.subr.bf16.mxu0 %v2099_v25  ;;  %1937 = vmatprep.subr.bf16.mxu1 %v2100_v49 }
 0x3aa   :  { %1737 = vmatmul.mubr.msk.bf16.vlgmr.msra.gmra.mxu0 %vm1140_vm4, %v1099_v1  ;;  %1738 = vmatmul.mubr.msk.bf16.vlgmr.msra.gmra.mxu1 %vm1140_vm4, %v1099_v1 }
 0x3ab   :  { %1916 = vmatpush3.bf16.msra.mxu0 %v2101_v6  ;;  %1938 = vmatpush3.bf16.msra.mxu1 %v2102_v7 }
 0x3ac   :  { %1917 = vmatprep.subr.bf16.mxu0 %v2103_v13  ;;  %1939 = vmatprep.subr.bf16.mxu1 %v2104_v45 }
 0x3af   :  { %1918 = vmatpush3.bf16.msra.mxu0 %v2105_v10  ;;  %1940 = vmatpush3.bf16.msra.mxu1 %v2106_v2 }
 0x3b0   :  { %1919 = vmatprep.subr.bf16.mxu0 %v2107_v3  ;;  %1941 = vmatprep.subr.bf16.mxu1 %v2108_v9 }
 0x3b3   :  { %1920 = vmatpush3.bf16.msra.mxu0 %v2109_v14  ;;  %1942 = vmatpush3.bf16.msra.mxu1 %v2110_v11 }
 0x3b4   :  { %1921 = vmatprep.subr.bf16.mxu0 %v2111_v46  ;;  %1943 = vmatprep.subr.bf16.mxu1 %v2112_v24 }
 0x3b7   :  { %1922 = vmatpush3.bf16.msra.mxu0 %v2113_v60  ;;  %1944 = vmatpush3.bf16.msra.mxu1 %v2114_v0 }
 0x3b8   :  { %1923 = vmatprep.subr.bf16.mxu0 %v2270_v16  ;;  %1945 = vmatprep.subr.bf16.mxu1 %v2282_v18 }
 0x3bb   :  { %1924 = vmatpush3.bf16.msra.mxu0 %v2276_v17  ;;  %1946 = vmatpush3.bf16.msra.mxu1 %v2288_v19 }
 0x3bc   :  { %1925 = vmatprep.subr.bf16.mxu0 %v2294_v20  ;;  %1947 = vmatprep.subr.bf16.mxu1 %v2306_v23 }
 0x3bf   :  { %1926 = vmatpush3.bf16.msra.mxu0 %v2300_v22  ;;  %1948 = vmatpush3.bf16.msra.mxu1 %v2327_v30 }
 0x3c0   :  { %1927 = vmatprep.subr.bf16.mxu0 %v2332_v31  ;;  %1949 = vmatprep.subr.bf16.mxu1 %v2344_v35 }
 0x3c3   :  { %1928 = vmatpush3.bf16.msra.mxu0 %v2338_v34  ;;  %1950 = vmatpush3.bf16.msra.mxu1 %v2355_v38 }
 0x3c4   :  { %1929 = vmatprep.subr.bf16.mxu0 %v2361_v39  ;;  %1951 = vmatprep.subr.bf16.mxu1 %v2375_v43 }
 0x3c7   :  { %1930 = vmatpush3.bf16.msra.mxu0 %v2369_v42  ;;  %1952 = vmatpush3.bf16.msra.mxu1 %v2382_v48 }
 0x3c8   :  { %1959 = vmatprep.subr.bf16.mxu0 %v2399_v55  ;;  %1981 = vmatprep.subr.bf16.mxu1 %v2410_v63 }
 0x462   :  { %v1178_v16 = vpop.f32.mrf.mxu0  ;;  %v1219_v17 = vpop.f32.mrf.mxu1 }
 0x463   :  { %v1308_v18 = vmul.f32 %v1178_v16, %v1178_v16  ;;  %v1310_v22 = vmul.f32 %v1219_v17, %v1219_v17 }
 0x464   :  { %v1180_v19 = vpop.f32.mrf.mxu0  ;;  %v1221_v20 = vpop.f32.mrf.mxu1 }
 0x465   :  { %v1309_v23 = vmul.f32 %v1180_v19, %v1180_v19  ;;  %v1316_v34 = vsel %vm823_vm0, %v1308_v18, 0.0  ;;  %v1311_v38 = vmul.f32 %v1221_v20, %v1221_v20  ;;  %v1319_v48 = vsel %vm823_vm0, %v1310_v22, 0.0 }
 0x466   :  { %v1182_v30 = vpop.f32.mrf.mxu0  ;;  %v1223_v31 = vpop.f32.mrf.mxu1 }
 0x467   :  { %v1317_v35 = vsel %vm823_vm0, %v1309_v23, 0.0  ;;  %v1321_v40 = vsel %vm823_vm0, %v1311_v38, 0.0 }
 0x468   :  { %v1318_v39 = vadd.f32 %v1317_v35, %v1316_v34  ;;  %v1183_v42 = vpop.f32.mrf.mxu0  ;;  %v1224_v43 = vpop.f32.mrf.mxu1 }
 0x46a   :  { %v1320_v55 = vadd.f32 %v1319_v48, %v1318_v39  ;;  %v1260_v63 = vpop.f32.mrf.mxu0  ;;  %v1301_v28 = vpop.f32.mrf.mxu1 }
 0x46b   :  { %v1312_v52 = vmul.f32 %v1260_v63, %v1260_v63  ;;  %v1314_v25 = vmul.f32 %v1301_v28, %v1301_v28 }
 0x46c   :  { %v1322_v5 = vadd.f32 %v1321_v40, %v1320_v55  ;;  %v1262_v12 = vpop.f32.mrf.mxu0  ;;  %v1303_v33 = vpop.f32.mrf.mxu1 }
 0x46d   :  { %v1323_v1 = vsel %vm823_vm0, %v1312_v52, 0.0  ;;  %v1313_v49 = vmul.f32 %v1262_v12, %v1262_v12  ;;  %v1315_v10 = vmul.f32 %v1303_v33, %v1303_v33  ;;  %v1327_v14 = vsel %vm823_vm0, %v1314_v25, 0.0 }
 0x46e   :  { %v1324_v6 = vadd.f32 %v1323_v1, %v1322_v5  ;;  %v1264_v7 = vpop.f32.mrf.mxu0  ;;  %v1305_v13 = vpop.f32.mrf.mxu1 }
 0x46f   :  { %v1325_v45 = vsel %vm823_vm0, %v1313_v49, 0.0  ;;  %v1329_v46 = vsel %vm823_vm0, %v1315_v10, 0.0 }
 0x470   :  { %v1326_v2 = vadd.f32 %v1325_v45, %v1324_v6  ;;  %v1265_v3 = vpop.f32.mrf.mxu0  ;;  %v1306_v9 = vpop.f32.mrf.mxu1 }
 0x472   :  { %v1328_v11 = vadd.f32 %v1327_v14, %v1326_v2 }
 0x474   :  { %v1330_v24 = vadd.f32 %v1329_v46, %v1328_v11 }
 0x476   :  { %1331 = vadd.xlane.f32.xlu0 %v1330_v24 }
 0x4ff   :  { %v1332_v60 = vpop.xlane.xlu0 %1331 }
 0x500   :  { %2087 = vrsqrt.f32 %v1332_v60  ;;  %vm1335_vm5 = vcmp.eq.f32.partialorder %v1332_v60, inf  ;;  %v1338_v22 = vand.u32 2147483648, %v1332_v60  ;;  %vm1337_vm6 = vcmp.eq.f32.partialorder %v1332_v60, 0.0 }
 0x50d   :  { %v2088_v0 = vpop.eup %2087 }
 0x50e   :  { %v1334_v18 = vmul.f32 %v2088_v0, %v1332_v60 }
 0x510   :  { %v1336_v23 = vsel %vm1335_vm5, %v1332_v60, %v1334_v18 }
 0x511   :  { %v1339_v30 = vsel %vm1337_vm6, %v1338_v22, %v1336_v23 }
 0x512   :  { %v1340_v31 = vadd.f32 1e-08, %v1339_v30 }
 0x514   :  { %2089 = vrcp.f32 %v1340_v31 }
 0x521   :  { %v2090_v34 = vpop.eup %2089 }
 0x522   :  { %v1342_v35 = vmul.f32 %v2090_v34, %v1178_v16  ;;  %v1343_v38 = vmul.f32 %v2090_v34, %v1180_v19  ;;  %v1344_v39 = vmul.f32 %v2090_v34, %v1219_v17  ;;  %v1345_v42 = vmul.f32 %v2090_v34, %v1221_v20  ;;  %v2115_v17 = vld [vmem:[%s2859_s0] sm:$0xff]  ;;  %s2141_s0 = smov [#allocation2]  }
 0x523   :  { %v1346_v43 = vmul.f32 %v2090_v34, %v1260_v63  ;;  %v1347_v48 = vmul.f32 %v2090_v34, %v1262_v12  ;;  %v1348_v55 = vmul.f32 %v2090_v34, %v1301_v28  ;;  %v1349_v40 = vmul.f32 %v2090_v34, %v1303_v33  ;;  %s1654_s21 = sshll.u32 %s2141_s0, 4  ;;  %s1655_s21 = int_to_ptr.vmem [resolvable:$true] %s1654_s21 }
 0x524   :  { %v1358_v52 = vcombine.low %v1342_v35, %v1343_v38  ;;  %v1359_v5 = vcombine.low %v1344_v39, %v1345_v42  ;;  %s2116_s1 = scalar_lea.vmem %s1655_s21, 16  ;;  %s2120_s22 = scalar_lea.vmem %s1655_s21, 32 }
 0x525   :  { %v1375_v1 = vcombine.low %v1346_v43, %v1347_v48  ;;  %v1376_v25 = vcombine.low %v1348_v55, %v1349_v40  ;;  %p2117_p0 = scmp.ne.s32.totalorder %s1655_s21, %s2116_s1  ;;  %p2121_p1 = scmp.lt.s32.totalorder %s1655_s21, %s1655_s21 }
 0x526   :  { %v1366_v49 = vrot.slane %v1358_v52, %v2347_v36  ;;  %v1373_v6 = vrot.slane %v1359_v5, %v2347_v36  ;;  %p2122_p2 = scmp.lt.s32.totalorder %s2120_s22, %s2116_s1 }
 0x527   :  { %v1383_v7 = vrot.slane %v1375_v1, %v2347_v36  ;;  %v1390_v13 = vrot.slane %v1376_v25, %v2347_v36 }
 0x528   :  { %v1374_v16 = vcombine.low %v1366_v49, %v1373_v6  ;;  %p2123_p3 = por %p2122_p2, %p2121_p1 }
 0x529   :  { %v1391_v19 = vcombine.low %v1383_v7, %v1390_v13 }
 0x52a   :  { %v1394_v20 = vadd.f32 %v2115_v17, %v1374_v16  ;;  %p2124_p4 = pnand %p2123_p3, %p2117_p0 }
 0x52b   :  { %v1395_v63 = vadd.f32 %v1391_v19, %v2578_v50 }
 0x52c   :  { %v1405_v28 = vrot.slane %v1394_v20, %v2347_v36  ;;  %v1398_v12 = vcombine.high %v1394_v20, %v1394_v20 }
 0x52d   :  { %v1422_v33 = vrot.slane %v1395_v63, %v2347_v36  ;;  %v1415_v45 = vcombine.high %v1395_v63, %v1395_v63 }
 0x52e   :  { %v1413_v10 = vcombine.high %v1405_v28, %v1405_v28  ;;  %v1412_v2 = vrot.slane %v1398_v12, %v2347_v36  ;;  %v1440_v46 = vpack.c.bf16 %v1405_v28, %v1405_v28 }
 0x52f   :  { %v1430_v3 = vcombine.high %v1422_v33, %v1422_v33  ;;  %v1429_v9 = vrot.slane %v1415_v45, %v2347_v36  ;;  %v2935_v36 = vld [vmem:[#allocation14_spill] sm:$0xff] }
 0x530   :  { %v1441_v14 = vpack.c.bf16 %v1413_v10, %v1413_v10  ;;  %v1414_v11 = vcombine.high %v1412_v2, %v1412_v2  ;;  %v1442_v0 = vpack.c.bf16 %v1412_v2, %v1412_v2 }
 0x531   :  { %v1431_v24 = vcombine.high %v1429_v9, %v1429_v9  ;;  %v1445_v50 = vpack.c.bf16 %v1430_v3, %v1430_v3 }
 0x532   :  { %1480 = vmatprep.mubr.bf16.mxu0 %v1441_v14  ;;  %v1443_v60 = vpack.c.bf16 %v1414_v11, %v1414_v11  ;;  %v2946_v14 = vld [vmem:[#allocation5_spill] sm:$0xff] }
 0x533   :  { %1481 = vmatmul.mubr.bf16.vlgmr.msra.gmra.mxu0 %v1440_v46  ;;  %v1447_v18 = vpack.c.bf16 %v1431_v24, %v1431_v24  ;;  %vm1636_vm8 = vcmp.lt.s32.totalorder %v2946_v14, 2 }
 0x534   :  { %1960 = vmatpush3.bf16.msra.mxu0 %v2416_v32  ;;  %1520 = vmatprep.mubr.bf16.mxu1 %v1443_v60  ;;  %v2936_v32 = vld [vmem:[#allocation15_spill] sm:$0xff] }
 0x535   :  { %1560 = vmatprep.mubr.bf16.mxu0 %v1445_v50  ;;  %1521 = vmatmul.mubr.bf16.vlgmr.msra.gmra.mxu1 %v1442_v0 }
 0x536   :  { %1982 = vmatpush3.bf16.msra.mxu1 %v2428_v47  ;;  %1961 = vmatprep.subr.bf16.mxu0 %v2423_v44  ;;  %v2937_v44 = vld [vmem:[#allocation16_spill] sm:$0xff]  ;;  %v2938_v47 = vld [vmem:[#allocation17_spill] sm:$0xff] }
 0x537   :  { %1600 = vmatprep.mubr.bf16.mxu1 %v1447_v18  ;;  %1983 = vmatprep.subr.bf16.mxu1 %v2434_v51  ;;  %v2939_v51 = vld [vmem:[#allocation18_spill] sm:$0xff] }
 0x538   :  { %1962 = vmatpush3.bf16.msra.mxu0 %v2440_v53  ;;  %v2940_v53 = vld [vmem:[#allocation19_spill] sm:$0xff] }
 0x539   :  { %1963 = vmatprep.subr.bf16.mxu0 %v2447_v56  ;;  %v2941_v56 = vld [vmem:[#allocation20_spill] sm:$0xff] }
 0x53a   :  { %1984 = vmatpush3.bf16.msra.mxu1 %v2453_v58  ;;  %v2942_v58 = vld [vmem:[#allocation21_spill] sm:$0xff] }
 0x53b   :  { %1985 = vmatprep.subr.bf16.mxu1 %v2459_v59  ;;  %v2943_v59 = vld [vmem:[#allocation22_spill] sm:$0xff] }
 0x53c   :  { %1964 = vmatpush3.bf16.msra.mxu0 %v2465_v61  ;;  %v2944_v61 = vld [vmem:[#allocation23_spill] sm:$0xff] }
 0x53d   :  { %1965 = vmatprep.subr.bf16.mxu0 %v2471_v62  ;;  %v1444_v62 = vpack.c.bf16 %v1422_v33, %v1422_v33 }
 0x53e   :  { %1986 = vmatpush3.bf16.msra.mxu1 %v2477_v21  ;;  %v2945_v21 = vld [vmem:[#allocation24_spill] sm:$0xff] }
 0x53f   :  { %1987 = vmatprep.subr.bf16.mxu1 %v2920_v15  ;;  %v1446_v15 = vpack.c.bf16 %v1429_v9, %v1429_v9 }
 0x540   :  { %1966 = vmatpush3.bf16.msra.mxu0 %v2921_v26 }
 0x541   :  { %1967 = vmatprep.subr.bf16.mxu0 %v2922_v27 }
 0x542   :  { %1988 = vmatpush3.bf16.msra.mxu1 %v2923_v29 }
 0x543   :  { %1989 = vmatprep.subr.bf16.mxu1 %v2924_v37 }
 0x544   :  { %1968 = vmatpush3.bf16.msra.mxu0 %v2925_v41 }
 0x545   :  { %1969 = vmatprep.subr.bf16.mxu0 %v2926_v54 }
 0x546   :  { %1990 = vmatpush3.bf16.msra.mxu1 %v2927_v57 }
 0x547   :  { %1991 = vmatprep.subr.bf16.mxu1 %v2935_v36 }
 0x548   :  { %1970 = vmatpush3.bf16.msra.mxu0 %v2936_v32 }
 0x549   :  { %1971 = vmatprep.subr.bf16.mxu0 %v2937_v44 }
 0x54a   :  { %1992 = vmatpush3.bf16.msra.mxu1 %v2938_v47 }
 0x54b   :  { %1993 = vmatprep.subr.bf16.mxu1 %v2939_v51 }
 0x54c   :  { %1972 = vmatpush3.bf16.msra.mxu0 %v2940_v53 }
 0x54d   :  { %1973 = vmatprep.subr.bf16.mxu0 %v2941_v56 }
 0x54e   :  { %1994 = vmatpush3.bf16.msra.mxu1 %v2942_v58 }
 0x54f   :  { %1995 = vmatprep.subr.bf16.mxu1 %v2943_v59 }
 0x550   :  { %1974 = vmatpush3.bf16.msra.mxu0 %v2944_v61 }
 0x552   :  { %1996 = vmatpush3.bf16.msra.mxu1 %v2945_v21 }
 0x553   :  { %1561 = vmatmul.mubr.bf16.vlgmr.msra.gmra.mxu0 %v1444_v62 }
 0x555   :  { %1601 = vmatmul.mubr.bf16.vlgmr.msra.gmra.mxu1 %v1446_v15 }
 0x5f3   :  { %v1931_v26 = vpop.f32.mrf.mxu0 }
 0x5f5   :  { %v1932_v27 = vpop.f32.mrf.mxu0  ;;  %v1953_v29 = vpop.f32.mrf.mxu1 }
 0x5f6   :  { %v1933_v23 = vadd.f32 %v1932_v27, %v1931_v26 }
 0x5f7   :  { %v1934_v37 = vpop.f32.mrf.mxu0  ;;  %v1954_v41 = vpop.f32.mrf.mxu1 }
 0x5f8   :  { %v1483_v30 = vadd.f32 %v1933_v23, %v2685_v4  ;;  %v1955_v31 = vadd.f32 %v1954_v41, %v1953_v29 }
 0x5f9   :  { %v1935_v54 = vpop.f32.mrf.mxu0  ;;  %v1956_v57 = vpop.f32.mrf.mxu1 }
 0x5fa   :  { %v1523_v39 = vadd.f32 %v1955_v31, %v1483_v30 }
 0x5fb   :  { %v1957_v22 = vpop.f32.mrf.mxu1 }
 0x613   :  { %v1975_v34 = vpop.f32.mrf.mxu0 }
 0x615   :  { %v1976_v35 = vpop.f32.mrf.mxu0  ;;  %v1997_v38 = vpop.f32.mrf.mxu1 }
 0x616   :  { %v1977_v42 = vadd.f32 %v1976_v35, %v1975_v34 }
 0x617   :  { %v1978_v43 = vpop.f32.mrf.mxu0  ;;  %v1998_v48 = vpop.f32.mrf.mxu1 }
 0x618   :  { %v1563_v55 = vadd.f32 %v1977_v42, %v1523_v39  ;;  %v1999_v40 = vadd.f32 %v1998_v48, %v1997_v38 }
 0x619   :  { %v1979_v52 = vpop.f32.mrf.mxu0  ;;  %v2000_v5 = vpop.f32.mrf.mxu1 }
 0x61a   :  { %v1603_v1 = vadd.f32 %v1999_v40, %v1563_v55 }
 0x61b   :  { %v2001_v25 = vpop.f32.mrf.mxu1 }
 0x61c   :  { %v1608_v49 = vsel %vm763_vm3, %v1603_v1, -inf }
 0x61d   :  { %1609 = vmax.xlane.f32.xlu1 %v1608_v49 }
 0x6a6   :  { %v1610_v6 = vpop.xlane.xlu1 %1609 }
 0x6a7   :  { %v1611_v7 = vsub.f32 %v1603_v1, %v1610_v6 }
 0x6a9   :  { %v1612_v4 = vmul.f32 1.442695, %v1611_v7 }
 0x6ab   :  { %2091 = vpow2.f32 %v1612_v4 }
 0x6b8   :  { %v2092_v13 = vpop.eup %2091 }
 0x6b9   :  { %v1614_v16 = vsel %vm763_vm3, %v2092_v13, 0.0 }
 0x6ba   :  { %1615 = vadd.xlane.f32.xlu0 %v1614_v16 }
 0x743   :  { %v1616_v19 = vpop.xlane.xlu0 %1615 }
 0x744   :  { %2093 = vrcp.f32 %v1616_v19 }
 0x745   :  { %2095 = vlog2.f32 %v2709_v8 }
 0x751   :  { %v2094_v17 = vpop.eup %2093 }
 0x752   :  { %v1618_v20 = vmul.f32 %v2094_v17, %v2092_v13  ;;  %v2096_v28 = vpop.eup %2095 }
 0x753   :  { %v1624_v45 = vmul.f32 0.6931472, %v2096_v28 }
 0x754   :  { %v1619_v63 = vadd.f32 1e-16, %v1618_v20 }
 0x756   :  { %2097 = vlog2.f32 %v1619_v63 }
 0x763   :  { %v2098_v12 = vpop.eup %2097 }
 0x764   :  { %v1621_v33 = vmul.f32 0.6931472, %v2098_v12 }
 0x766   :  { %v1625_v10 = vsub.f32 %v1624_v45, %v1621_v33 }
 0x768   :  { %v1626_v2 = vmul.f32 %v1625_v10, %v2709_v8 }
 0x76a   :  { %v1627_v3 = vsel %vm1622_vm7, %v1626_v2, 0.0 }
 0x76b   :  { %v1628_v9 = vsel %vm763_vm3, %v1627_v3, 0.0 }
 0x76c   :  { %1629 = vadd.xlane.f32.xlu1 %v1628_v9 }
 0x7f5   :  { %v1630_v11 = vpop.xlane.xlu1 %1629 }
 0x7f6   :  { %v1637_v46 = vsel %vm1636_vm8, %v1630_v11, 0.0 }
 0x7f7   :  { %v1638_v24 = vsel %vm823_vm0, %v1637_v46, 0.0 }
 0x7f8   :  { %v1639_v60 = vrot.slane %v1638_v24, 4 }
 0x7fa   :  { %v1640_v50 = vadd.f32 %v1639_v60, %v1638_v24 }
 0x7fc   :  { %v1641_v0 = vrot.slane %v1640_v50, 2 }
 0x7fe   :  { %v1642_v18 = vadd.f32 %v1641_v0, %v1640_v50 }
 0x800   :  { %v1643_v36 = vrot.slane %v1642_v18, 1 }
 0x802   :  { %v1644_v32 = vadd.f32 %v1643_v36, %v1642_v18 }
 0x804   :  { %v1645_v8 = vmul.f32 0.5, %v1644_v32 }
 0x806   :  { %1647 = vst.msk [vmem:[#allocation2] sm:$0x1] %vm1646_vm9, %v1645_v8 }
 0x807   :  { %2127 = shalt.err (!%p2124_p4)
}
 0x808   :  { %1657 = dma.vmem_to_hbm [thread:$0]  %s1655_s21, 16, %s2864_s5, [#allocation3]  }
 0x809   :  { %2136 = dma.done.wait [#allocation3], 16  }
 0x80a   :  { %2137 = vsyncadd [#allocation3], 4294967280 }
 0x80b   :  { %1661 = vsyncpa [#allocation3], 1 }

</bundles_post_ra>
